<compile_context>
chip_gen: v7x
topology: tpu7x:2x2x1
jax: 0.10.0
libtpu: 0.0.40
codegen_flags: <defaults>
</compile_context>

<pallas_src>
import jax
import jax.numpy as jnp
from jax.experimental import pallas as pl
from jax.experimental.pallas import tpu as pltpu

_LANE = 128          # TPU lane width (fast vreg axis)
_SUBLANE = 8         # TPU sublane count (slow vreg axis)
_VMEM_BUDGET_BYTES = 12 * 1024 * 1024   # conservative double-buffer budget (fits v5e default)


def _make_ensemble_kernel(n_models):
    """Builds a kernel closed over the (static) ensemble size."""

    def kernel(w_ref, b_ref, *refs):
        # w_ref: (N,)  f32 in SMEM (scalar-prefetched)  -- fc weight
        # b_ref: (1,)  f32 in SMEM (scalar-prefetched)  -- fc bias
        # refs[:N]: per-model (tb_rows, 128) lane/sublane-dense VMEM tiles
        # refs[N] : (tb_rows, 128) output tile
        x_refs = refs[:n_models]
        o_ref = refs[n_models]

        # VPU weighted sum: N scalar-times-vreg FMAs with f32 accumulation.
        acc = x_refs[0][...].astype(jnp.float32) * w_ref[0]
        for i in range(1, n_models):
            acc = acc + x_refs[i][...].astype(jnp.float32) * w_ref[i]

        o_ref[...] = (acc + b_ref[0]).astype(o_ref.dtype)

    return kernel


def ensemble_forward(xs, weight, bias, *, block_rows=2048):
    """xs: list/tuple of arrays each (B, 1); weight: (1, N); bias: (1,).

    Returns (B, 1), matching nn.Linear(N, 1) applied to the concatenation.
    """
    n = len(xs)
    B = xs[0].shape[0]
    dtype = xs[0].dtype
    itemsize = jnp.dtype(dtype).itemsize

    # Pad B to a multiple of the lane width only when necessary; for the common
    # case (B % 128 == 0) the (rows, 128) reshape is free metadata, no HBM copy.
    b_pad = max(_LANE, ((B + _LANE - 1) // _LANE) * _LANE)
    rows = b_pad // _LANE

    # Tile sizing: target ~block_rows x 128 per input, capped so that the
    # double-buffered footprint (n inputs + 1 output, 2 buffers each) stays
    # inside the conservative VMEM budget (generation-safe).
    per_tile_budget = _VMEM_BUDGET_BYTES // (2 * (n + 1))
    rows_from_budget = max(
        _SUBLANE, (per_tile_budget // (_LANE * itemsize)) // _SUBLANE * _SUBLANE
    )
    target_rows = min(block_rows, rows_from_budget)
    if rows <= target_rows:
        tb_rows = rows                                   # full extent (any value OK)
    else:
        tb_rows = max(_SUBLANE, (target_rows // _SUBLANE) * _SUBLANE)
    num_blocks = pl.cdiv(rows, tb_rows)                  # ragged tail handled by Pallas

    def to_tile(x):
        row = x.reshape(-1)                              # (B,)  -- (B,1) squeeze
        if b_pad != B:
            row = jnp.pad(row, (0, b_pad - B))           # only the <=128-lane tail case
        return row.reshape(rows, _LANE)                  # (rows, 128): full vreg packing

    x_tiles = [to_tile(x) for x in xs]
    w_flat = weight.reshape(n).astype(jnp.float32)       # (N,)
    b_flat = bias.reshape(1).astype(jnp.float32)         # (1,)

    # index_maps receive the scalar-prefetch refs as trailing positional args.
    tile_spec = pl.BlockSpec((tb_rows, _LANE), lambda i, w, b: (i, 0))

    out = pl.pallas_call(
        _make_ensemble_kernel(n),
        out_shape=jax.ShapeDtypeStruct((rows, _LANE), dtype),
        grid_spec=pltpu.PrefetchScalarGridSpec(
            num_scalar_prefetch=2,           # fc weight + bias live in SMEM, loaded once
            grid=(num_blocks,),
            in_specs=[tile_spec] * n,
            out_specs=tile_spec,
        ),
        compiler_params=pltpu.CompilerParams(
            dimension_semantics=("parallel",),   # independent B-tiles (megacore on v7x)
        ),
        cost_estimate=pl.CostEstimate(
            flops=2 * n * b_pad,
            transcendentals=0,
            bytes_accessed=(n + 1) * b_pad * itemsize,
        ),
    )(w_flat, b_flat, *x_tiles)

    # Back to PyTorch output layout (B, 1); slice is a no-op when B % 128 == 0.
    return out.reshape(-1)[:B].reshape(B, 1)


if __name__ == "__main__":
    key = jax.random.PRNGKey(0)

    num_models = 4   # len(models)
    batch = 8

    # Deterministic per-model outputs: each (B, 1), as ensemble members would produce.
    k_x, k_w, k_b = jax.random.split(key, 3)
    xs = [
        jax.random.normal(jax.random.fold_in(k_x, i), (batch, 1), dtype=jnp.float32)
        for i in range(num_models)
    ]

    # nn.Linear(num_models, 1) parameters (PyTorch default U(-1/sqrt(fan_in), 1/sqrt(fan_in))).
    bound = 1.0 / jnp.sqrt(jnp.float32(num_models))
    fc_weight = jax.random.uniform(
        k_w, (1, num_models), minval=-bound, maxval=bound, dtype=jnp.float32
    )
    fc_bias = jax.random.uniform(
        k_b, (1,), minval=-bound, maxval=bound, dtype=jnp.float32
    )

    out = ensemble_forward(xs, fc_weight, fc_bias)
    out = jax.block_until_ready(out)

    # Reference check in plain JAX (the original concat + Linear).
    x_cat = jnp.concatenate(tuple(xs), axis=1)
    ref = x_cat @ fc_weight.T + fc_bias
    assert out.shape == (batch, 1)
    assert jnp.allclose(out, ref, atol=1e-5, rtol=1e-5)

    print("KERNEL_OK")
</pallas_src>

<mosaic_0001>
module attributes {stable_mosaic.version = 11 : i64} {
  func.func @kernel(%arg0: i32, %arg1: memref<4xf32, #tpu.memory_space<smem>>, %arg2: memref<1xf32, #tpu.memory_space<smem>>, %arg3: memref<1x128xf32, #tpu.memory_space<vmem>>, %arg4: memref<1x128xf32, #tpu.memory_space<vmem>>, %arg5: memref<1x128xf32, #tpu.memory_space<vmem>>, %arg6: memref<1x128xf32, #tpu.memory_space<vmem>>, %arg7: memref<1x128xf32, #tpu.memory_space<vmem>>) attributes {dimension_semantics = [#tpu.dimension_semantics<parallel>], iteration_bounds = array<i64: 1>, scalar_prefetch = 2 : i64, scratch_operands = 0 : i64, tpu.core_type = #tpu.core_type<tc>, window_params = [{transform_indices = @transform_0, window_bounds = array<i64: 1, 128>}, {transform_indices = @transform_1, window_bounds = array<i64: 1, 128>}, {transform_indices = @transform_2, window_bounds = array<i64: 1, 128>}, {transform_indices = @transform_3, window_bounds = array<i64: 1, 128>}, {transform_indices = @transform_4, window_bounds = array<i64: 1, 128>}]} {
    %c0 = arith.constant 0 : index
    %c0_0 = arith.constant 0 : index
    %0 = vector.load %arg3[%c0, %c0_0] : memref<1x128xf32, #tpu.memory_space<vmem>>, vector<1x128xf32>
    %c0_1 = arith.constant 0 : index
    %1 = memref.load %arg1[%c0_1] : memref<4xf32, #tpu.memory_space<smem>>
    %2 = vector.broadcast %1 : f32 to vector<1x128xf32>
    %3 = arith.mulf %0, %2 : vector<1x128xf32>
    %c0_2 = arith.constant 0 : index
    %c0_3 = arith.constant 0 : index
    %4 = vector.load %arg4[%c0_2, %c0_3] : memref<1x128xf32, #tpu.memory_space<vmem>>, vector<1x128xf32>
    %c1 = arith.constant 1 : index
    %5 = memref.load %arg1[%c1] : memref<4xf32, #tpu.memory_space<smem>>
    %6 = vector.broadcast %5 : f32 to vector<1x128xf32>
    %7 = arith.mulf %4, %6 : vector<1x128xf32>
    %8 = arith.addf %3, %7 : vector<1x128xf32>
    %c0_4 = arith.constant 0 : index
    %c0_5 = arith.constant 0 : index
    %9 = vector.load %arg5[%c0_4, %c0_5] : memref<1x128xf32, #tpu.memory_space<vmem>>, vector<1x128xf32>
    %c2 = arith.constant 2 : index
    %10 = memref.load %arg1[%c2] : memref<4xf32, #tpu.memory_space<smem>>
    %11 = vector.broadcast %10 : f32 to vector<1x128xf32>
    %12 = arith.mulf %9, %11 : vector<1x128xf32>
    %13 = arith.addf %8, %12 : vector<1x128xf32>
    %c0_6 = arith.constant 0 : index
    %c0_7 = arith.constant 0 : index
    %14 = vector.load %arg6[%c0_6, %c0_7] : memref<1x128xf32, #tpu.memory_space<vmem>>, vector<1x128xf32>
    %c3 = arith.constant 3 : index
    %15 = memref.load %arg1[%c3] : memref<4xf32, #tpu.memory_space<smem>>
    %16 = vector.broadcast %15 : f32 to vector<1x128xf32>
    %17 = arith.mulf %14, %16 : vector<1x128xf32>
    %18 = arith.addf %13, %17 : vector<1x128xf32>
    %c0_8 = arith.constant 0 : index
    %19 = memref.load %arg2[%c0_8] : memref<1xf32, #tpu.memory_space<smem>>
    %20 = vector.broadcast %19 : f32 to vector<1x128xf32>
    %21 = arith.addf %18, %20 : vector<1x128xf32>
    %c0_9 = arith.constant 0 : index
    %c0_10 = arith.constant 0 : index
    %22 = vector.load %arg7[%c0_9, %c0_10] : memref<1x128xf32, #tpu.memory_space<vmem>>, vector<1x128xf32>
    tpu.vector_store %arg7[%c0_9, %c0_10], %21 {strides = array<i32>} : memref<1x128xf32, #tpu.memory_space<vmem>>, vector<1x128xf32>,
    return
  }
  func.func @transform_0(%arg0: i32, %arg1: memref<4xf32, #tpu.memory_space<smem>>, %arg2: memref<1xf32, #tpu.memory_space<smem>>) -> (i32, i32) {
    %c0_i32 = arith.constant 0 : i32
    %c0_i32_0 = arith.constant 0 : i32
    return %arg0, %c0_i32 : i32, i32
  }
  func.func @transform_1(%arg0: i32, %arg1: memref<4xf32, #tpu.memory_space<smem>>, %arg2: memref<1xf32, #tpu.memory_space<smem>>) -> (i32, i32) {
    %c0_i32 = arith.constant 0 : i32
    %c0_i32_0 = arith.constant 0 : i32
    return %arg0, %c0_i32 : i32, i32
  }
  func.func @transform_2(%arg0: i32, %arg1: memref<4xf32, #tpu.memory_space<smem>>, %arg2: memref<1xf32, #tpu.memory_space<smem>>) -> (i32, i32) {
    %c0_i32 = arith.constant 0 : i32
    %c0_i32_0 = arith.constant 0 : i32
    return %arg0, %c0_i32 : i32, i32
  }
  func.func @transform_3(%arg0: i32, %arg1: memref<4xf32, #tpu.memory_space<smem>>, %arg2: memref<1xf32, #tpu.memory_space<smem>>) -> (i32, i32) {
    %c0_i32 = arith.constant 0 : i32
    %c0_i32_0 = arith.constant 0 : i32
    return %arg0, %c0_i32 : i32, i32
  }
  func.func @transform_4(%arg0: i32, %arg1: memref<4xf32, #tpu.memory_space<smem>>, %arg2: memref<1xf32, #tpu.memory_space<smem>>) -> (i32, i32) {
    %c0_i32 = arith.constant 0 : i32
    %c0_i32_0 = arith.constant 0 : i32
    return %arg0, %c0_i32 : i32, i32
  }
}

</mosaic_0001>

<bundles_post_ra>
// kernel: tpu_custom_call.1
= control target key start
LH: loop header
LB: loop body
LE: loop exit
PB: predicated region body
PF: predicated region fallthrough
CT: control target
= control target key end

     0   :  { %s174_s0 = inlined_call_operand.vmem [shape: f32[4], index: 0, kind: input, shape index: {}]   ;;  %s175_s1 = inlined_call_operand.<no memory space> [shape: f32[1], index: 1, kind: input, shape index: {}]   ;;  %s176_s2 = inlined_call_operand.vmem [shape: f32[1,128], index: 2, kind: input, shape index: {}]   ;;  %s177_s3 = inlined_call_operand.vmem [shape: f32[1,128], index: 3, kind: input, shape index: {}]   ;;  %s178_s4 = inlined_call_operand.vmem [shape: f32[1,128], index: 4, kind: input, shape index: {}]   ;;  %s179_s5 = inlined_call_operand.vmem [shape: f32[1,128], index: 5, kind: input, shape index: {}]   ;;  %s180_s6 = inlined_call_operand.hbm [shape: f32[1,128], index: 6, kind: output, shape index: {}]  }
   0x1   :  { %s11_s23 = sshll.u32 %s174_s0, 4  ;;  %s12_s23 = int_to_ptr.vmem [resolvable:$true] %s11_s23 }
   0x2   :  { %s69_s24 = scalar_lea.vmem %s12_s23, 16  ;;  %p74_p1 = scmp.lt.s32.totalorder %s12_s23, %s12_s23 }
   0x3   :  { %p70_p0 = scmp.ne.s32.totalorder %s12_s23, %s69_s24  ;;  %p75_p2 = scmp.lt.s32.totalorder %s69_s24, %s69_s24 }
   0x5   :  { %p76_p3 = por %p75_p2, %p74_p1 }
   0x7   :  { %p77_p4 = pnand %p76_p3, %p70_p0 }
   0x9   :  { %80 = shalt.err (!%p77_p4)  }
   0xa   :  { %s107_s25 = smov [#allocation3]  }
   0xb   :  { %14 = dma.vmem_to_smem %s12_s23, 16, %s107_s25, [#allocation2] }
   0xc   :  { %103 = dma.done.wait [#allocation2], 16 }
   0xd   :  { %104 = vsyncadd [#allocation2], 4294967280 }
   0xe   :  { %17 = sfence }
   0xf   :  { %s28_s26 = sld [smem:[#allocation3]]  ;;  %s64_s27 = sld [smem:[#allocation3 + $0x1]] }
  0x10   :  { %s65_s28 = sld [smem:[#allocation3 + $0x2]]  ;;  %s66_s29 = sld [smem:[#allocation3 + $0x3]] }
  0x11   :  { %18 = vsyncpa [#allocation6], 0  ;;  %v27_v0 = vld [vmem:[%s176_s2] sm:$0x1]  ;;  %v47_v14 = vstv %s175_s1  ;;  %s108_s13 = smov [#allocation5]  }
  0x12   :  { %v31_v1 = vld [vmem:[%s177_s3] sm:$0x1] }
  0x13   :  { %v36_v2 = vld [vmem:[%s178_s4] sm:$0x1]  ;;  %s56_s4 = sshll.u32 %s108_s13, 4  ;;  %s57_s4 = int_to_ptr.vmem [resolvable:$true] %s56_s4 }
  0x14   :  { %v41_v7 = vld [vmem:[%s179_s5] sm:$0x1]  ;;  %s81_s14 = scalar_lea.vmem %s57_s4, 16  ;;  %s85_s15 = scalar_lea.vmem %s57_s4, 32 }
  0x15   :  { %v29_v3 = vstv %s28_s26  ;;  %v33_v5 = vstv %s64_s27  ;;  %p82_p5 = scmp.ne.s32.totalorder %s57_s4, %s81_s14  ;;  %p86_p6 = scmp.lt.s32.totalorder %s57_s4, %s57_s4 }
  0x16   :  { %v30_v4 = vmul.f32 %v29_v3, %v27_v0  ;;  %v38_v6 = vstv %s65_s28  ;;  %v34_v8 = vmul.f32 %v33_v5, %v31_v1  ;;  %v43_v10 = vstv %s66_s29  ;;  %p87_p7 = scmp.lt.s32.totalorder %s85_s15, %s81_s14 }
  0x17   :  { %v39_v9 = vmul.f32 %v38_v6, %v36_v2  ;;  %v44_v12 = vmul.f32 %v43_v10, %v41_v7 }
  0x18   :  { %v35_v11 = vadd.f32 %v34_v8, %v30_v4  ;;  %p88_p8 = por %p87_p7, %p86_p6 }
  0x1a   :  { %v40_v13 = vadd.f32 %v39_v9, %v35_v11  ;;  %p89_p9 = pnand %p88_p8, %p82_p5 }
  0x1c   :  { %v45_v15 = vadd.f32 %v44_v12, %v40_v13 }
  0x1e   :  { %v48_v16 = vadd.f32 %v47_v14, %v45_v15 }
  0x20   :  { %49 = vst [vmem:[#allocation5] sm:$0x1] %v48_v16 }
  0x21   :  { %92 = shalt.err (!%p89_p9)
}
  0x22   :  { %s93_s17 = scalar_lea.hbm %s180_s6, 16 }
  0x23   :  { %p94_p10 = scmp.ne.s32.totalorder %s180_s6, %s93_s17  ;;  %p97_p11 = scmp.lt.u32.totalorder %s93_s17, %s180_s6 }
  0x25   :  { %p99_p12 = pnand %p97_p11, %p94_p10 }
  0x27   :  { %102 = shalt.err (!%p99_p12)
}
  0x28   :  { %59 = dma.vmem_to_hbm [thread:$0]  %s57_s4, 16, %s180_s6, [#allocation6]  }
  0x29   :  { %105 = dma.done.wait [#allocation6], 16  }
  0x2a   :  { %106 = vsyncadd [#allocation6], 4294967280 }
  0x2b   :  { %63 = vsyncpa [#allocation6], 1 }

</bundles_post_ra>
